<compile_context>
chip_gen: v6e
topology: v6e:2x2x1
jax: 0.10.0
libtpu: 0.0.40
codegen_flags: <defaults>
</compile_context>

<pallas_src>
import jax
import jax.numpy as jnp
from jax.experimental import pallas as pl
from jax.experimental.pallas import tpu as pltpu


def _round_up(n, m):
    return ((n + m - 1) // m) * m


def mlp_kernel(x_ref, w1_ref, b1_ref, w2_ref, b2_ref, w3_ref, b3_ref,
               y_ref, h2_ref):
    # x: (TM, Din_p) bf16 tile; weights bf16; biases f32; MXU accumulates in f32.
    x = x_ref[...]

    h1 = jnp.dot(x, w1_ref[...], preferred_element_type=jnp.float32) + b1_ref[...]
    h1 = jnp.maximum(h1, 0.0)                                        # ReLU

    h2 = jnp.dot(h1.astype(w2_ref.dtype), w2_ref[...],
                 preferred_element_type=jnp.float32) + b2_ref[...]
    h2 = jnp.maximum(h2, 0.0)                                        # ReLU

    y = jnp.dot(h2.astype(w3_ref.dtype), w3_ref[...],
                preferred_element_type=jnp.float32) + b3_ref[...]

    y_ref[...] = y.astype(y_ref.dtype)
    h2_ref[...] = h2.astype(h2_ref.dtype)


def mlp_forward(x, params, *, compute_dtype=jnp.bfloat16, block_m=512):
    """x: (B, C, H, W) or (B, D). Returns (y_pred, h_2) like the PyTorch module (f32)."""
    w1, b1, w2, b2, w3, b3 = params
    batch = x.shape[0]
    x2d = x.reshape(batch, -1).astype(jnp.float32)                   # x.view(batch_size, -1)

    d_in = x2d.shape[1]
    d_h1, d_h2 = w1.shape[1], w2.shape[1]
    d_out = w3.shape[1]
    assert w1.shape == (d_in, d_h1) and w2.shape == (d_h1, d_h2) and w3.shape == (d_h2, d_out)

    # Lane-align every feature dim (exact: padding is zeros, sliced off at the end).
    d_in_p = _round_up(d_in, 128)
    d_h1_p = _round_up(d_h1, 128)       # 250 -> 256
    d_h2_p = _round_up(d_h2, 128)       # 100 -> 128
    d_out_p = _round_up(d_out, 128)     # 10  -> 128

    # Batch tile (>= 8 sublanes); pad batch to a multiple of the tile.
    tm = min(block_m, _round_up(batch, 8))
    b_pad = _round_up(_round_up(batch, 8), tm)

    def pad2(a, rows, cols):
        return jnp.pad(a, ((0, rows - a.shape[0]), (0, cols - a.shape[1])))

    xp = pad2(x2d, b_pad, d_in_p).astype(compute_dtype)
    w1p = pad2(w1, d_in_p, d_h1_p).astype(compute_dtype)
    w2p = pad2(w2, d_h1_p, d_h2_p).astype(compute_dtype)
    w3p = pad2(w3, d_h2_p, d_out_p).astype(compute_dtype)
    b1p = pad2(b1.reshape(1, d_h1).astype(jnp.float32), 1, d_h1_p)
    b2p = pad2(b2.reshape(1, d_h2).astype(jnp.float32), 1, d_h2_p)
    b3p = pad2(b3.reshape(1, d_out).astype(jnp.float32), 1, d_out_p)

    grid = (b_pad // tm,)

    def row_spec(cols):
        return pl.BlockSpec((tm, cols), lambda i: (i, 0))

    def const_spec(shape):
        return pl.BlockSpec(shape, lambda i: (0, 0))       # resident across grid steps

    y_p, h2_p = pl.pallas_call(
        mlp_kernel,
        grid=grid,
        out_shape=(
            jax.ShapeDtypeStruct((b_pad, d_out_p), jnp.float32),
            jax.ShapeDtypeStruct((b_pad, d_h2_p), jnp.float32),
        ),
        in_specs=[
            row_spec(d_in_p),
            const_spec(w1p.shape), const_spec(b1p.shape),
            const_spec(w2p.shape), const_spec(b2p.shape),
            const_spec(w3p.shape), const_spec(b3p.shape),
        ],
        out_specs=(
            row_spec(d_out_p),
            row_spec(d_h2_p),
        ),
        compiler_params=pltpu.CompilerParams(
            dimension_semantics=("parallel",),
        ),
    )(xp, w1p, b1p, w2p, b2p, w3p, b3p)

    return y_p[:batch, :d_out], h2_p[:batch, :d_h2]


def init_params(key, input_dim, output_dim):
    """Deterministic init matching nn.Linear shapes (weights stored transposed: (in, out))."""
    dims = [(input_dim, 250), (250, 100), (100, output_dim)]
    params = []
    for (fan_in, fan_out) in dims:
        key, kw, kb = jax.random.split(key, 3)
        bound = 1.0 / jnp.sqrt(fan_in)
        w = jax.random.uniform(kw, (fan_in, fan_out), jnp.float32, -bound, bound)
        b = jax.random.uniform(kb, (fan_out,), jnp.float32, -bound, bound)
        params.extend([w, b])
    return tuple(params)


if __name__ == "__main__":
    key = jax.random.PRNGKey(0)
    kx, kp = jax.random.split(key)

    # Small, forward-consistent shapes: NCHW input flattened by the module.
    batch, C, H, W = 2, 4, 16, 16
    input_dim = C * H * W          # 1024
    output_dim = 10

    x = jax.random.normal(kx, (batch, C, H, W), jnp.float32)
    params = init_params(kp, input_dim, output_dim)

    y_pred, h_2 = mlp_forward(x, params)
    jax.block_until_ready((y_pred, h_2))

    # Reference check in plain JAX with the same bf16-input / f32-accumulate recipe.
    w1, b1, w2, b2, w3, b3 = params
    cd = jnp.bfloat16
    xf = x.reshape(batch, -1)
    h1_ref = jnp.maximum(
        jnp.dot(xf.astype(cd), w1.astype(cd), preferred_element_type=jnp.float32) + b1, 0.0)
    h2_ref = jnp.maximum(
        jnp.dot(h1_ref.astype(cd), w2.astype(cd), preferred_element_type=jnp.float32) + b2, 0.0)
    y_ref = jnp.dot(h2_ref.astype(cd), w3.astype(cd), preferred_element_type=jnp.float32) + b3

    assert y_pred.shape == (batch, output_dim) and h_2.shape == (batch, 100)
    assert jnp.allclose(y_pred, y_ref, atol=2e-2, rtol=2e-2)
    assert jnp.allclose(h_2, h2_ref, atol=2e-2, rtol=2e-2)

    print("KERNEL_OK")
</pallas_src>

<mosaic_0001>
module attributes {stable_mosaic.version = 11 : i64} {
  func.func @mlp_kernel(%arg0: i32, %arg1: memref<8x1024xbf16, #tpu.memory_space<vmem>>, %arg2: memref<1024x256xbf16, #tpu.memory_space<vmem>>, %arg3: memref<1x256xf32, #tpu.memory_space<vmem>>, %arg4: memref<256x128xbf16, #tpu.memory_space<vmem>>, %arg5: memref<1x128xf32, #tpu.memory_space<vmem>>, %arg6: memref<128x128xbf16, #tpu.memory_space<vmem>>, %arg7: memref<1x128xf32, #tpu.memory_space<vmem>>, %arg8: memref<8x128xf32, #tpu.memory_space<vmem>>, %arg9: memref<8x128xf32, #tpu.memory_space<vmem>>) attributes {dimension_semantics = [#tpu.dimension_semantics<parallel>], iteration_bounds = array<i64: 1>, scalar_prefetch = 0 : i64, scratch_operands = 0 : i64, tpu.core_type = #tpu.core_type<tc>, window_params = [{transform_indices = @transform_0, window_bounds = array<i64: 8, 1024>}, {pipeline_mode = #tpu.pipeline_mode<synchronous>, transform_indices = @transform_1, window_bounds = array<i64: 1024, 256>}, {pipeline_mode = #tpu.pipeline_mode<synchronous>, transform_indices = @transform_2, window_bounds = array<i64: 1, 256>}, {pipeline_mode = #tpu.pipeline_mode<synchronous>, transform_indices = @transform_3, window_bounds = array<i64: 256, 128>}, {pipeline_mode = #tpu.pipeline_mode<synchronous>, transform_indices = @transform_4, window_bounds = array<i64: 1, 128>}, {pipeline_mode = #tpu.pipeline_mode<synchronous>, transform_indices = @transform_5, window_bounds = array<i64: 128, 128>}, {pipeline_mode = #tpu.pipeline_mode<synchronous>, transform_indices = @transform_6, window_bounds = array<i64: 1, 128>}, {transform_indices = @transform_7, window_bounds = array<i64: 8, 128>}, {transform_indices = @transform_8, window_bounds = array<i64: 8, 128>}]} {
    %c0 = arith.constant 0 : index
    %c0_0 = arith.constant 0 : index
    %0 = vector.load %arg1[%c0, %c0_0] : memref<8x1024xbf16, #tpu.memory_space<vmem>>, vector<8x1024xbf16>
    %c0_1 = arith.constant 0 : index
    %c0_2 = arith.constant 0 : index
    %1 = vector.load %arg2[%c0_1, %c0_2] : memref<1024x256xbf16, #tpu.memory_space<vmem>>, vector<1024x256xbf16>
    %cst = arith.constant dense<0.000000e+00> : vector<8x256xf32>
    %2 = tpu.matmul %0, %1, %cst {dimension_numbers = #tpu.dot_dimension_numbers<[1], [0], [0], [1], [0, 0, 1, 1], [], []>} : vector<8x1024xbf16>, vector<1024x256xbf16>, vector<8x256xf32> -> vector<8x256xf32>
    %c0_3 = arith.constant 0 : index
    %c0_4 = arith.constant 0 : index
    %3 = vector.load %arg3[%c0_3, %c0_4] : memref<1x256xf32, #tpu.memory_space<vmem>>, vector<1x256xf32>
    %4 = vector.broadcast %3 : vector<1x256xf32> to vector<8x256xf32>
    %5 = arith.addf %2, %4 : vector<8x256xf32>
    %cst_5 = arith.constant 0.000000e+00 : f32
    %6 = vector.broadcast %cst_5 : f32 to vector<8x256xf32>
    %7 = arith.maximumf %5, %6 : vector<8x256xf32>
    %8 = arith.truncf %7 : vector<8x256xf32> to vector<8x256xbf16>
    %c0_6 = arith.constant 0 : index
    %c0_7 = arith.constant 0 : index
    %9 = vector.load %arg4[%c0_6, %c0_7] : memref<256x128xbf16, #tpu.memory_space<vmem>>, vector<256x128xbf16>
    %cst_8 = arith.constant dense<0.000000e+00> : vector<8x128xf32>
    %10 = tpu.matmul %8, %9, %cst_8 {dimension_numbers = #tpu.dot_dimension_numbers<[1], [0], [0], [1], [0, 0, 1, 1], [], []>} : vector<8x256xbf16>, vector<256x128xbf16>, vector<8x128xf32> -> vector<8x128xf32>
    %c0_9 = arith.constant 0 : index
    %c0_10 = arith.constant 0 : index
    %11 = vector.load %arg5[%c0_9, %c0_10] : memref<1x128xf32, #tpu.memory_space<vmem>>, vector<1x128xf32>
    %12 = vector.broadcast %11 : vector<1x128xf32> to vector<8x128xf32>
    %13 = arith.addf %10, %12 : vector<8x128xf32>
    %cst_11 = arith.constant 0.000000e+00 : f32
    %14 = vector.broadcast %cst_11 : f32 to vector<8x128xf32>
    %15 = arith.maximumf %13, %14 : vector<8x128xf32>
    %16 = arith.truncf %15 : vector<8x128xf32> to vector<8x128xbf16>
    %c0_12 = arith.constant 0 : index
    %c0_13 = arith.constant 0 : index
    %17 = vector.load %arg6[%c0_12, %c0_13] : memref<128x128xbf16, #tpu.memory_space<vmem>>, vector<128x128xbf16>
    %cst_14 = arith.constant dense<0.000000e+00> : vector<8x128xf32>
    %18 = tpu.matmul %16, %17, %cst_14 {dimension_numbers = #tpu.dot_dimension_numbers<[1], [0], [0], [1], [0, 0, 1, 1], [], []>} : vector<8x128xbf16>, vector<128x128xbf16>, vector<8x128xf32> -> vector<8x128xf32>
    %c0_15 = arith.constant 0 : index
    %c0_16 = arith.constant 0 : index
    %19 = vector.load %arg7[%c0_15, %c0_16] : memref<1x128xf32, #tpu.memory_space<vmem>>, vector<1x128xf32>
    %20 = vector.broadcast %19 : vector<1x128xf32> to vector<8x128xf32>
    %21 = arith.addf %18, %20 : vector<8x128xf32>
    %c0_17 = arith.constant 0 : index
    %c0_18 = arith.constant 0 : index
    %22 = vector.load %arg8[%c0_17, %c0_18] : memref<8x128xf32, #tpu.memory_space<vmem>>, vector<8x128xf32>
    tpu.vector_store %arg8[%c0_17, %c0_18], %21 {strides = array<i32>} : memref<8x128xf32, #tpu.memory_space<vmem>>, vector<8x128xf32>,
    %c0_19 = arith.constant 0 : index
    %c0_20 = arith.constant 0 : index
    %23 = vector.load %arg9[%c0_19, %c0_20] : memref<8x128xf32, #tpu.memory_space<vmem>>, vector<8x128xf32>
    tpu.vector_store %arg9[%c0_19, %c0_20], %15 {strides = array<i32>} : memref<8x128xf32, #tpu.memory_space<vmem>>, vector<8x128xf32>,
    return
  }
  func.func @transform_0(%arg0: i32) -> (i32, i32) {
    %c0_i32 = arith.constant 0 : i32
    %c0_i32_0 = arith.constant 0 : i32
    return %arg0, %c0_i32 : i32, i32
  }
  func.func @transform_1(%arg0: i32) -> (i32, i32) {
    %c0_i32 = arith.constant 0 : i32
    %c0_i32_0 = arith.constant 0 : i32
    %c0_i32_1 = arith.constant 0 : i32
    return %c0_i32, %c0_i32_0 : i32, i32
  }
  func.func @transform_2(%arg0: i32) -> (i32, i32) {
    %c0_i32 = arith.constant 0 : i32
    %c0_i32_0 = arith.constant 0 : i32
    %c0_i32_1 = arith.constant 0 : i32
    return %c0_i32, %c0_i32_0 : i32, i32
  }
  func.func @transform_3(%arg0: i32) -> (i32, i32) {
    %c0_i32 = arith.constant 0 : i32
    %c0_i32_0 = arith.constant 0 : i32
    %c0_i32_1 = arith.constant 0 : i32
    return %c0_i32, %c0_i32_0 : i32, i32
  }
  func.func @transform_4(%arg0: i32) -> (i32, i32) {
    %c0_i32 = arith.constant 0 : i32
    %c0_i32_0 = arith.constant 0 : i32
    %c0_i32_1 = arith.constant 0 : i32
    return %c0_i32, %c0_i32_0 : i32, i32
  }
  func.func @transform_5(%arg0: i32) -> (i32, i32) {
    %c0_i32 = arith.constant 0 : i32
    %c0_i32_0 = arith.constant 0 : i32
    %c0_i32_1 = arith.constant 0 : i32
    return %c0_i32, %c0_i32_0 : i32, i32
  }
  func.func @transform_6(%arg0: i32) -> (i32, i32) {
    %c0_i32 = arith.constant 0 : i32
    %c0_i32_0 = arith.constant 0 : i32
    %c0_i32_1 = arith.constant 0 : i32
    return %c0_i32, %c0_i32_0 : i32, i32
  }
  func.func @transform_7(%arg0: i32) -> (i32, i32) {
    %c0_i32 = arith.constant 0 : i32
    %c0_i32_0 = arith.constant 0 : i32
    return %arg0, %c0_i32 : i32, i32
  }
  func.func @transform_8(%arg0: i32) -> (i32, i32) {
    %c0_i32 = arith.constant 0 : i32
    %c0_i32_0 = arith.constant 0 : i32
    return %arg0, %c0_i32 : i32, i32
  }
}

</mosaic_0001>

<bundles_post_ra>
// kernel: tpu_custom_call.1
= control target key start
LH: loop header
LB: loop body
LE: loop exit
PB: predicated region body
PF: predicated region fallthrough
CT: control target
= control target key end

     0   :  { %14 = vsyncpa [#allocation3], 0  ;;  %s2060_s0 = inlined_call_operand.hbm [shape: bf16[8,1024], index: 0, kind: input, shape index: {}]   ;;  %s2061_s1 = inlined_call_operand.hbm [shape: bf16[1024,256], index: 1, kind: input, shape index: {}]   ;;  %s2062_s2 = inlined_call_operand.vmem [shape: f32[1,256], index: 2, kind: input, shape index: {}]   ;;  %s2063_s3 = inlined_call_operand.hbm [shape: bf16[256,128], index: 3, kind: input, shape index: {}]   ;;  %s2064_s4 = inlined_call_operand.vmem [shape: f32[1,128], index: 4, kind: input, shape index: {}]   ;;  %s2065_s5 = inlined_call_operand.hbm [shape: bf16[128,128], index: 5, kind: input, shape index: {}]   ;;  %s2066_s6 = inlined_call_operand.vmem [shape: f32[1,128], index: 6, kind: input, shape index: {}]   ;;  %s2067_s7 = inlined_call_operand.hbm [shape: f32[8,128], index: 7, kind: output, shape index: {0}]   ;;  %s2068_s8 = inlined_call_operand.hbm [shape: f32[8,128], index: 8, kind: output, shape index: {1}]  }
   0x1   :  { %15 = vsyncpa [#allocation6], 0 }
   0x2   :  { %16 = vsyncpa [#allocation9], 0 }
   0x3   :  { %17 = vsyncpa [#allocation4], 0 }
   0x4   :  { %18 = vsyncpa [#allocation12], 0  ;;  %s1964_s27 = smov [#allocation5]  }
   0x5   :  { %s34_s28 = sshll.u32 %s1964_s27, 4  ;;  %s35_s28 = int_to_ptr.vmem [resolvable:$true] %s34_s28 }
   0x6   :  { %s1842_s29 = scalar_lea.vmem %s35_s28, 16384  ;;  %p1847_p1 = scmp.lt.s32.totalorder %s35_s28, %s35_s28 }
   0x7   :  { %p1843_p0 = scmp.ne.s32.totalorder %s35_s28, %s1842_s29  ;;  %p1848_p2 = scmp.lt.s32.totalorder %s1842_s29, %s1842_s29 }
   0x9   :  { %p1849_p3 = por %p1848_p2, %p1847_p1 }
   0xb   :  { %p1850_p4 = pnand %p1849_p3, %p1843_p0 }
   0xd   :  { %1853 = shalt.err (!%p1850_p4)
}
   0xe   :  { %s1965_s30 = smov 128   ;;  %s1966_s9 = smov 8  }
   0xf   :  { %40 = dma.hbm_to_vmem [thread:$0]  %s2061_s1, 16384, %s35_s28, [#allocation6], %s1965_s30, %s1965_s30, %s1966_s9  }
  0x10   :  { %s1967_s12 = smov [#allocation2]   ;;  %s1968_s14 = smov [#allocation7]  }
  0x11   :  { %s25_s13 = sshll.u32 %s1967_s12, 4  ;;  %s48_s15 = sshll.u32 %s1968_s14, 4  ;;  %s26_s13 = int_to_ptr.vmem [resolvable:$true] %s25_s13  ;;  %s49_s15 = int_to_ptr.vmem [resolvable:$true] %s48_s15 }
  0x12   :  { %s1862_s16 = scalar_lea.vmem %s26_s13, 512  ;;  %p1867_p6 = scmp.lt.s32.totalorder %s26_s13, %s26_s13 }
  0x13   :  { %p1863_p5 = scmp.ne.s32.totalorder %s26_s13, %s1862_s16  ;;  %p1868_p7 = scmp.lt.s32.totalorder %s1862_s16, %s1862_s16 }
  0x15   :  { %p1869_p8 = por %p1868_p7, %p1867_p6 }
  0x17   :  { %p1870_p9 = pnand %p1869_p8, %p1863_p5 }
  0x19   :  { %1873 = shalt.err (!%p1870_p9)
}
  0x1a   :  { %28 = dma.hbm_to_vmem [thread:$0]  %s2060_s0, 512, %s26_s13, [#allocation3]  }
  0x1b   :  { %s1882_s19 = scalar_lea.vmem %s49_s15, 2048  ;;  %p1887_p11 = scmp.lt.s32.totalorder %s49_s15, %s49_s15 }
  0x1c   :  { %p1883_p10 = scmp.ne.s32.totalorder %s49_s15, %s1882_s19  ;;  %p1888_p12 = scmp.lt.s32.totalorder %s1882_s19, %s1882_s19 }
  0x1e   :  { %p1889_p13 = por %p1888_p12, %p1887_p11 }
  0x20   :  { %p1890_p0 = pnand %p1889_p13, %p1883_p10 }
  0x22   :  { %1893 = shalt.err (!%p1890_p0)
}
  0x23   :  { %s1969_s1 = smov 64   ;;  %s1970_s20 = smov 4  }
  0x24   :  { %54 = dma.hbm_to_vmem [thread:$0]  %s2063_s3, 2048, %s49_s15, [#allocation6], %s1969_s1, %s1969_s1, %s1970_s20  }
  0x25   :  { %s1971_s23 = smov [#allocation8]  }
  0x26   :  { %s62_s24 = sshll.u32 %s1971_s23, 4  ;;  %s63_s24 = int_to_ptr.vmem [resolvable:$true] %s62_s24 }
  0x27   :  { %s1902_s25 = scalar_lea.vmem %s63_s24, 1024  ;;  %p1907_p2 = scmp.lt.s32.totalorder %s63_s24, %s63_s24 }
  0x28   :  { %p1903_p1 = scmp.ne.s32.totalorder %s63_s24, %s1902_s25  ;;  %p1908_p3 = scmp.lt.s32.totalorder %s1902_s25, %s1902_s25 }
  0x2a   :  { %p1909_p4 = por %p1908_p3, %p1907_p2 }
  0x2c   :  { %p1910_p5 = pnand %p1909_p4, %p1903_p1 }
  0x2e   :  { %1913 = shalt.err (!%p1910_p5)
}
  0x2f   :  { %68 = dma.hbm_to_vmem [thread:$0]  %s2065_s5, 1024, %s63_s24, [#allocation9], %s1969_s1, %s1969_s1, %s1970_s20  }
  0x30   :  { %1954 = dma.done.wait [#allocation3], 512  }
  0x31   :  { %1955 = vsyncadd [#allocation3], 4294966784 }
  0x32   :  { %1956 = dma.done.wait [#allocation6], 18432  }
  0x33   :  { %1957 = vsyncadd [#allocation6], 4294948864 }
  0x34   :  { %1958 = dma.done.wait [#allocation9], 1024  }
  0x35   :  { %1959 = vsyncadd [#allocation9], 4294966272  ;;  %v1610_v0 = vld [vmem:[#allocation5 + $0x74] ss:$8 sps:$4 sm:$0xff]   ;;  %v1614_v2 = vld [vmem:[#allocation5 + $0x70] ss:$8 sps:$4 sm:$0xff]  }
  0x36   :  { %v1612_v1 = vld [vmem:[#allocation5 + $0x174] ss:$8 sps:$4 sm:$0xff]   ;;  %896 = vmatprep.subr.bf16.mxu0 %v1610_v0  ;;  %v1615_v3 = vld [vmem:[#allocation5 + $0x170] ss:$8 sps:$4 sm:$0xff]   ;;  %v1616_v4 = vld [vmem:[#allocation5 + $0x64] ss:$8 sps:$4 sm:$0xff]  }
  0x37   :  { %937 = vmatprep.subr.bf16.mxu1 %v1612_v1  ;;  %897 = vmatpush1.bf16.msra.mxu0 %v1614_v2  ;;  %v1618_v5 = vld [vmem:[#allocation5 + $0x164] ss:$8 sps:$4 sm:$0xff]   ;;  %v1620_v6 = vld [vmem:[#allocation5 + $0x60] ss:$8 sps:$4 sm:$0xff]   ;;  %v1622_v8 = vld [vmem:[#allocation5 + $0x54] ss:$8 sps:$4 sm:$0xff]  }
  0x38   :  { %938 = vmatpush1.bf16.msra.mxu1 %v1615_v3  ;;  %898 = vmatprep.subr.bf16.mxu0 %v1616_v4  ;;  %v1621_v7 = vld [vmem:[#allocation5 + $0x160] ss:$8 sps:$4 sm:$0xff]   ;;  %v1624_v9 = vld [vmem:[#allocation5 + $0x154] ss:$8 sps:$4 sm:$0xff]   ;;  %v1626_v10 = vld [vmem:[#allocation5 + $0x50] ss:$8 sps:$4 sm:$0xff]  }
  0x39   :  { %939 = vmatprep.subr.bf16.mxu1 %v1618_v5  ;;  %v1627_v11 = vld [vmem:[#allocation5 + $0x150] ss:$8 sps:$4 sm:$0xff]   ;;  %v1628_v12 = vld [vmem:[#allocation5 + $0x44] ss:$8 sps:$4 sm:$0xff]   ;;  %v1632_v14 = vld [vmem:[#allocation5 + $0x40] ss:$8 sps:$4 sm:$0xff]  }
  0x3a   :  { %v1630_v13 = vld [vmem:[#allocation5 + $0x144] ss:$8 sps:$4 sm:$0xff]   ;;  %v1633_v15 = vld [vmem:[#allocation5 + $0x140] ss:$8 sps:$4 sm:$0xff]   ;;  %v1634_v16 = vld [vmem:[#allocation5 + $0x34] ss:$8 sps:$4 sm:$0xff]  }
  0x3b   :  { %899 = vmatpush1.bf16.msra.mxu0 %v1620_v6  ;;  %v1636_v17 = vld [vmem:[#allocation5 + $0x134] ss:$8 sps:$4 sm:$0xff]   ;;  %v1638_v18 = vld [vmem:[#allocation5 + $0x30] ss:$8 sps:$4 sm:$0xff]   ;;  %v1640_v20 = vld [vmem:[#allocation5 + $0x24] ss:$8 sps:$4 sm:$0xff]  }
  0x3c   :  { %940 = vmatpush1.bf16.msra.mxu1 %v1621_v7  ;;  %900 = vmatprep.subr.bf16.mxu0 %v1622_v8  ;;  %v1639_v19 = vld [vmem:[#allocation5 + $0x130] ss:$8 sps:$4 sm:$0xff]   ;;  %v1642_v21 = vld [vmem:[#allocation5 + $0x124] ss:$8 sps:$4 sm:$0xff]   ;;  %v1644_v22 = vld [vmem:[#allocation5 + $0x20] ss:$8 sps:$4 sm:$0xff]  }
  0x3d   :  { %941 = vmatprep.subr.bf16.mxu1 %v1624_v9  ;;  %v1645_v23 = vld [vmem:[#allocation5 + $0x120] ss:$8 sps:$4 sm:$0xff]   ;;  %v1646_v24 = vld [vmem:[#allocation5 + $0x14] ss:$8 sps:$4 sm:$0xff]   ;;  %v1650_v26 = vld [vmem:[#allocation5 + $0x10] ss:$8 sps:$4 sm:$0xff]  }
  0x3e   :  { %v1648_v25 = vld [vmem:[#allocation5 + $0x114] ss:$8 sps:$4 sm:$0xff]   ;;  %v1651_v27 = vld [vmem:[#allocation5 + $0x110] ss:$8 sps:$4 sm:$0xff]   ;;  %v1652_v28 = vld [vmem:[#allocation5 + $0x4] ss:$8 sps:$4 sm:$0xff]  }
  0x3f   :  { %901 = vmatpush1.bf16.msra.mxu0 %v1626_v10  ;;  %v1654_v29 = vld [vmem:[#allocation5 + $0x104] ss:$8 sps:$4 sm:$0xff]   ;;  %v1656_v30 = vld [vmem:[#allocation5] ss:$8 sps:$4 sm:$0xff]   ;;  %v1658_v32 = vld [vmem:[#allocation5 + $0xf4] ss:$8 sps:$4 sm:$0xff]  }
  0x40   :  { %942 = vmatpush1.bf16.msra.mxu1 %v1627_v11  ;;  %902 = vmatprep.subr.bf16.mxu0 %v1628_v12  ;;  %v1657_v31 = vld [vmem:[#allocation5 + $0x100] ss:$8 sps:$4 sm:$0xff]   ;;  %v1660_v33 = vld [vmem:[#allocation5 + $0x1f4] ss:$8 sps:$4 sm:$0xff]   ;;  %v1662_v34 = vld [vmem:[#allocation5 + $0xf0] ss:$8 sps:$4 sm:$0xff]  }
  0x41   :  { %943 = vmatprep.subr.bf16.mxu1 %v1630_v13  ;;  %v1663_v35 = vld [vmem:[#allocation5 + $0x1f0] ss:$8 sps:$4 sm:$0xff]   ;;  %v1664_v36 = vld [vmem:[#allocation5 + $0xe4] ss:$8 sps:$4 sm:$0xff]   ;;  %v1668_v38 = vld [vmem:[#allocation5 + $0xe0] ss:$8 sps:$4 sm:$0xff]  }
  0x42   :  { %v1666_v37 = vld [vmem:[#allocation5 + $0x1e4] ss:$8 sps:$4 sm:$0xff]   ;;  %v1669_v39 = vld [vmem:[#allocation5 + $0x1e0] ss:$8 sps:$4 sm:$0xff]   ;;  %v1670_v40 = vld [vmem:[#allocation5 + $0xd4] ss:$8 sps:$4 sm:$0xff]  }
  0x43   :  { %903 = vmatpush1.bf16.msra.mxu0 %v1632_v14  ;;  %v1672_v41 = vld [vmem:[#allocation5 + $0x1d4] ss:$8 sps:$4 sm:$0xff]   ;;  %v1674_v42 = vld [vmem:[#allocation5 + $0xd0] ss:$8 sps:$4 sm:$0xff]   ;;  %v1676_v44 = vld [vmem:[#allocation5 + $0xc4] ss:$8 sps:$4 sm:$0xff]  }
  0x44   :  { %944 = vmatpush1.bf16.msra.mxu1 %v1633_v15  ;;  %904 = vmatprep.subr.bf16.mxu0 %v1634_v16  ;;  %v1675_v43 = vld [vmem:[#allocation5 + $0x1d0] ss:$8 sps:$4 sm:$0xff]   ;;  %v1678_v45 = vld [vmem:[#allocation5 + $0x1c4] ss:$8 sps:$4 sm:$0xff]   ;;  %v1680_v49 = vld [vmem:[#allocation5 + $0xc0] ss:$8 sps:$4 sm:$0xff]  }
  0x45   :  { %945 = vmatprep.subr.bf16.mxu1 %v1636_v17  ;;  %v84_v46 = vld [vmem:[#allocation2] sm:$0xff]  ;;  %v85_v48 = vld [vmem:[#allocation2 + $0x8] sm:$0xff]  ;;  %v1682_v52 = vld [vmem:[#allocation5 + $0xb4] ss:$8 sps:$4 sm:$0xff]   ;;  %vm1973_vm0 = vmmov 0   ;;  %s1974_s28 = smov [#allocation11]  }
  0x46   :  { %v1386_v47 = vcombine.high %v84_v46, %v84_v46  ;;  %v1681_v50 = vld [vmem:[#allocation5 + $0x1c0] ss:$8 sps:$4 sm:$0xff]   ;;  %v1388_v51 = vcombine.high %v85_v48, %v85_v48  ;;  %v1684_v53 = vld [vmem:[#allocation5 + $0x1b4] ss:$8 sps:$4 sm:$0xff]   ;;  %v1686_v54 = vld [vmem:[#allocation5 + $0xb0] ss:$8 sps:$4 sm:$0xff]   ;;  %v1385_v6 = vcombine.low %v84_v46, %v84_v46  ;;  %v1387_v7 = vcombine.low %v85_v48, %v85_v48 }
  0x47   :  { %905 = vmatpush1.bf16.msra.mxu0 %v1638_v18  ;;  %v1687_v55 = vld [vmem:[#allocation5 + $0x1b0] ss:$8 sps:$4 sm:$0xff]   ;;  %v1688_v56 = vld [vmem:[#allocation5 + $0xa4] ss:$8 sps:$4 sm:$0xff]   ;;  %v1692_v58 = vld [vmem:[#allocation5 + $0xa0] ss:$8 sps:$4 sm:$0xff]  }
  0x48   :  { %946 = vmatpush1.bf16.msra.mxu1 %v1639_v19  ;;  %906 = vmatprep.subr.bf16.mxu0 %v1640_v20  ;;  %v1690_v57 = vld [vmem:[#allocation5 + $0x1a4] ss:$8 sps:$4 sm:$0xff]   ;;  %v1693_v59 = vld [vmem:[#allocation5 + $0x1a0] ss:$8 sps:$4 sm:$0xff]   ;;  %v1694_v60 = vld [vmem:[#allocation5 + $0x94] ss:$8 sps:$4 sm:$0xff]  }
  0x49   :  { %947 = vmatprep.subr.bf16.mxu1 %v1642_v21  ;;  %928 = vmatprep.mubr.bf16.mxu0 %v1386_v47  ;;  %v1696_v61 = vld [vmem:[#allocation5 + $0x194] ss:$8 sps:$4 sm:$0xff]   ;;  %v1698_v62 = vld [vmem:[#allocation5 + $0x90] ss:$8 sps:$4 sm:$0xff]   ;;  %v1700_v0 = vld [vmem:[#allocation5 + $0x84] ss:$8 sps:$4 sm:$0xff]  }
  0x4a   :  { %969 = vmatprep.mubr.bf16.mxu1 %v1388_v51  ;;  %v1699_v63 = vld [vmem:[#allocation5 + $0x190] ss:$8 sps:$4 sm:$0xff]   ;;  %v1702_v1 = vld [vmem:[#allocation5 + $0x184] ss:$8 sps:$4 sm:$0xff]   ;;  %v1704_v2 = vld [vmem:[#allocation5 + $0x80] ss:$8 sps:$4 sm:$0xff]  }
  0x4b   :  { %907 = vmatpush1.bf16.msra.mxu0 %v1644_v22  ;;  %v1705_v3 = vld [vmem:[#allocation5 + $0x180] ss:$8 sps:$4 sm:$0xff]   ;;  %v1712_v4 = vld [vmem:[#allocation5 + $0x274] ss:$8 sps:$4 sm:$0xff]   ;;  %v1710_v8 = vld [vmem:[#allocation5 + $0x270] ss:$8 sps:$4 sm:$0xff]  }
  0x4c   :  { %948 = vmatpush1.bf16.msra.mxu1 %v1645_v23  ;;  %908 = vmatprep.subr.bf16.mxu0 %v1646_v24  ;;  %v1715_v5 = vld [vmem:[#allocation5 + $0x374] ss:$8 sps:$4 sm:$0xff]   ;;  %v1713_v9 = vld [vmem:[#allocation5 + $0x370] ss:$8 sps:$4 sm:$0xff]   ;;  %v1718_v10 = vld [vmem:[#allocation5 + $0x264] ss:$8 sps:$4 sm:$0xff]  }
  0x4d   :  { %949 = vmatprep.subr.bf16.mxu1 %v1648_v25  ;;  %v1721_v11 = vld [vmem:[#allocation5 + $0x364] ss:$8 sps:$4 sm:$0xff]   ;;  %v1716_v12 = vld [vmem:[#allocation5 + $0x260] ss:$8 sps:$4 sm:$0xff]   ;;  %v1724_v14 = vld [vmem:[#allocation5 + $0x254] ss:$8 sps:$4 sm:$0xff]  }
  0x4e   :  { %v1719_v13 = vld [vmem:[#allocation5 + $0x360] ss:$8 sps:$4 sm:$0xff]   ;;  %v1727_v15 = vld [vmem:[#allocation5 + $0x354] ss:$8 sps:$4 sm:$0xff]   ;;  %v1722_v16 = vld [vmem:[#allocation5 + $0x250] ss:$8 sps:$4 sm:$0xff]  }
  0x4f   :  { %909 = vmatpush1.bf16.msra.mxu0 %v1650_v26  ;;  %v1725_v17 = vld [vmem:[#allocation5 + $0x350] ss:$8 sps:$4 sm:$0xff]   ;;  %v1730_v18 = vld [vmem:[#allocation5 + $0x244] ss:$8 sps:$4 sm:$0xff]   ;;  %v1728_v20 = vld [vmem:[#allocation5 + $0x240] ss:$8 sps:$4 sm:$0xff]  }
  0x50   :  { %950 = vmatpush1.bf16.msra.mxu1 %v1651_v27  ;;  %910 = vmatprep.subr.bf16.mxu0 %v1652_v28  ;;  %v1733_v19 = vld [vmem:[#allocation5 + $0x344] ss:$8 sps:$4 sm:$0xff]   ;;  %v1731_v21 = vld [vmem:[#allocation5 + $0x340] ss:$8 sps:$4 sm:$0xff]   ;;  %v1736_v22 = vld [vmem:[#allocation5 + $0x234] ss:$8 sps:$4 sm:$0xff]  }
  0x51   :  { %951 = vmatprep.subr.bf16.mxu1 %v1654_v29  ;;  %v1739_v23 = vld [vmem:[#allocation5 + $0x334] ss:$8 sps:$4 sm:$0xff]   ;;  %v1734_v24 = vld [vmem:[#allocation5 + $0x230] ss:$8 sps:$4 sm:$0xff]   ;;  %v1742_v26 = vld [vmem:[#allocation5 + $0x224] ss:$8 sps:$4 sm:$0xff]  }
  0x52   :  { %v1737_v25 = vld [vmem:[#allocation5 + $0x330] ss:$8 sps:$4 sm:$0xff]   ;;  %v1745_v27 = vld [vmem:[#allocation5 + $0x324] ss:$8 sps:$4 sm:$0xff]   ;;  %v1740_v28 = vld [vmem:[#allocation5 + $0x220] ss:$8 sps:$4 sm:$0xff]  }
  0x53   :  { %911 = vmatpush1.bf16.msra.mxu0 %v1656_v30  ;;  %v1743_v29 = vld [vmem:[#allocation5 + $0x320] ss:$8 sps:$4 sm:$0xff]   ;;  %v1748_v30 = vld [vmem:[#allocation5 + $0x214] ss:$8 sps:$4 sm:$0xff]   ;;  %v1766_v46 = vld [vmem:[#allocation5 + $0x2e4] ss:$8 sps:$4 sm:$0xff]  }
  0x54   :  { %952 = vmatpush1.bf16.msra.mxu1 %v1657_v31  ;;  %912 = vmatprep.subr.bf16.mxu0 %v1658_v32  ;;  %v1751_v31 = vld [vmem:[#allocation5 + $0x314] ss:$8 sps:$4 sm:$0xff]   ;;  %v1746_v32 = vld [vmem:[#allocation5 + $0x210] ss:$8 sps:$4 sm:$0xff]   ;;  %v1769_v47 = vld [vmem:[#allocation5 + $0x3e4] ss:$8 sps:$4 sm:$0xff]  }
  0x55   :  { %953 = vmatprep.subr.bf16.mxu1 %v1660_v33  ;;  %v1749_v33 = vld [vmem:[#allocation5 + $0x310] ss:$8 sps:$4 sm:$0xff]   ;;  %v1764_v48 = vld [vmem:[#allocation5 + $0x2e0] ss:$8 sps:$4 sm:$0xff]   ;;  %v1775_v51 = vld [vmem:[#allocation5 + $0x3d4] ss:$8 sps:$4 sm:$0xff]  }
  0x56   :  { %s1370_s29 = sshll.u32 %s1974_s28, 4  ;;  %s1371_s29 = int_to_ptr.vmem [resolvable:$true] %s1370_s29 }
  0x57   :  { %913 = vmatpush2.bf16.msra.mxu0 %v1662_v34  ;;  %v2033_v34 = vld [vmem:[#allocation2 + $0x10] sm:$0xff]  ;;  %s1914_s30 = scalar_lea.vmem %s1371_s29, 128  ;;  %p1919_p7 = scmp.lt.s32.totalorder %s1371_s29, %s1371_s29 }
  0x58   :  { %954 = vmatpush2.bf16.msra.mxu1 %v1663_v35  ;;  %914 = vmatprep.subr.bf16.mxu0 %v1664_v36  ;;  %v2035_v35 = vld [vmem:[#allocation2 + $0x18] sm:$0xff]  ;;  %v1754_v36 = vld [vmem:[#allocation5 + $0x204] ss:$8 sps:$4 sm:$0xff]   ;;  %p1915_p6 = scmp.ne.s32.totalorder %s1371_s29, %s1914_s30  ;;  %p1920_p8 = scmp.lt.s32.totalorder %s1914_s30, %s1914_s30 }
  0x59   :  { %955 = vmatprep.subr.bf16.mxu1 %v1666_v37  ;;  %v1757_v37 = vld [vmem:[#allocation5 + $0x304] ss:$8 sps:$4 sm:$0xff]  }
  0x5a   :  { %p1921_p9 = por %p1920_p8, %p1919_p7 }
  0x5b   :  { %915 = vmatpush2.bf16.msra.mxu0 %v1668_v38  ;;  %v1390_v38 = vcombine.high %v2033_v34, %v2033_v34 }
  0x5c   :  { %956 = vmatpush2.bf16.msra.mxu1 %v1669_v39  ;;  %916 = vmatprep.subr.bf16.mxu0 %v1670_v40  ;;  %v1392_v39 = vcombine.high %v2035_v35, %v2035_v35  ;;  %v1752_v40 = vld [vmem:[#allocation5 + $0x200] ss:$8 sps:$4 sm:$0xff]   ;;  %p1922_p10 = pnand %p1921_p9, %p1915_p6 }
  0x5d   :  { %957 = vmatprep.subr.bf16.mxu1 %v1672_v41  ;;  %v1755_v41 = vld [vmem:[#allocation5 + $0x300] ss:$8 sps:$4 sm:$0xff]  }
  0x5f   :  { %917 = vmatpush2.bf16.msra.mxu0 %v1674_v42  ;;  %v1760_v42 = vld [vmem:[#allocation5 + $0x2f4] ss:$8 sps:$4 sm:$0xff]  }
  0x60   :  { %958 = vmatpush2.bf16.msra.mxu1 %v1675_v43  ;;  %918 = vmatprep.subr.bf16.mxu0 %v1676_v44  ;;  %v1763_v43 = vld [vmem:[#allocation5 + $0x3f4] ss:$8 sps:$4 sm:$0xff]   ;;  %v1758_v44 = vld [vmem:[#allocation5 + $0x2f0] ss:$8 sps:$4 sm:$0xff]  }
  0x61   :  { %959 = vmatprep.subr.bf16.mxu1 %v1678_v45  ;;  %v1761_v45 = vld [vmem:[#allocation5 + $0x3f0] ss:$8 sps:$4 sm:$0xff]  }
  0x63   :  { %919 = vmatpush2.bf16.msra.mxu0 %v1680_v49  ;;  %v1767_v49 = vld [vmem:[#allocation5 + $0x3e0] ss:$8 sps:$4 sm:$0xff]  }
  0x64   :  { %960 = vmatpush2.bf16.msra.mxu1 %v1681_v50  ;;  %920 = vmatprep.subr.bf16.mxu0 %v1682_v52  ;;  %v1772_v50 = vld [vmem:[#allocation5 + $0x2d4] ss:$8 sps:$4 sm:$0xff]   ;;  %v1770_v52 = vld [vmem:[#allocation5 + $0x2d0] ss:$8 sps:$4 sm:$0xff]  }
  0x65   :  { %961 = vmatprep.subr.bf16.mxu1 %v1684_v53  ;;  %v1773_v53 = vld [vmem:[#allocation5 + $0x3d0] ss:$8 sps:$4 sm:$0xff]  }
  0x67   :  { %921 = vmatpush2.bf16.msra.mxu0 %v1686_v54  ;;  %v1778_v54 = vld [vmem:[#allocation5 + $0x2c4] ss:$8 sps:$4 sm:$0xff]  }
  0x68   :  { %962 = vmatpush2.bf16.msra.mxu1 %v1687_v55  ;;  %922 = vmatprep.subr.bf16.mxu0 %v1688_v56  ;;  %v1781_v55 = vld [vmem:[#allocation5 + $0x3c4] ss:$8 sps:$4 sm:$0xff]   ;;  %v1776_v56 = vld [vmem:[#allocation5 + $0x2c0] ss:$8 sps:$4 sm:$0xff]  }
  0x69   :  { %963 = vmatprep.subr.bf16.mxu1 %v1690_v57  ;;  %v1779_v57 = vld [vmem:[#allocation5 + $0x3c0] ss:$8 sps:$4 sm:$0xff]  }
  0x6b   :  { %923 = vmatpush2.bf16.msra.mxu0 %v1692_v58  ;;  %v1784_v58 = vld [vmem:[#allocation5 + $0x2b4] ss:$8 sps:$4 sm:$0xff]  }
  0x6c   :  { %964 = vmatpush2.bf16.msra.mxu1 %v1693_v59  ;;  %924 = vmatprep.subr.bf16.mxu0 %v1694_v60  ;;  %v1787_v59 = vld [vmem:[#allocation5 + $0x3b4] ss:$8 sps:$4 sm:$0xff]   ;;  %v1782_v60 = vld [vmem:[#allocation5 + $0x2b0] ss:$8 sps:$4 sm:$0xff]  }
  0x6d   :  { %965 = vmatprep.subr.bf16.mxu1 %v1696_v61  ;;  %v1785_v61 = vld [vmem:[#allocation5 + $0x3b0] ss:$8 sps:$4 sm:$0xff]  }
  0x6f   :  { %925 = vmatpush2.bf16.msra.mxu0 %v1698_v62  ;;  %v1790_v62 = vld [vmem:[#allocation5 + $0x2a4] ss:$8 sps:$4 sm:$0xff]  }
  0x70   :  { %966 = vmatpush2.bf16.msra.mxu1 %v1699_v63  ;;  %926 = vmatprep.subr.bf16.mxu0 %v1700_v0  ;;  %v1793_v63 = vld [vmem:[#allocation5 + $0x3a4] ss:$8 sps:$4 sm:$0xff]   ;;  %v1788_v0 = vld [vmem:[#allocation5 + $0x2a0] ss:$8 sps:$4 sm:$0xff]  }
  0x71   :  { %967 = vmatprep.subr.bf16.mxu1 %v1702_v1  ;;  %v1791_v1 = vld [vmem:[#allocation5 + $0x3a0] ss:$8 sps:$4 sm:$0xff]  }
  0x73   :  { %927 = vmatpush2.bf16.msra.mxu0 %v1704_v2  ;;  %v1796_v2 = vld [vmem:[#allocation5 + $0x294] ss:$8 sps:$4 sm:$0xff]  }
  0x74   :  { %968 = vmatpush2.bf16.msra.mxu1 %v1705_v3  ;;  %978 = vmatprep.subr.bf16.mxu0 %v1712_v4  ;;  %v1799_v3 = vld [vmem:[#allocation5 + $0x394] ss:$8 sps:$4 sm:$0xff]   ;;  %v1794_v4 = vld [vmem:[#allocation5 + $0x290] ss:$8 sps:$4 sm:$0xff]  }
  0x75   :  { %1019 = vmatprep.subr.bf16.mxu1 %v1715_v5  ;;  %v1797_v5 = vld [vmem:[#allocation5 + $0x390] ss:$8 sps:$4 sm:$0xff]  }
  0x76   :  { %929 = vmatmul.mubr.bf16.vlgmr.msra.gmra.mxu0 %v1385_v6  ;;  %v1802_v6 = vld [vmem:[#allocation5 + $0x284] ss:$8 sps:$4 sm:$0xff]  }
  0x77   :  { %970 = vmatmul.mubr.bf16.vlgmr.msra.gmra.mxu1 %v1387_v7  ;;  %979 = vmatpush1.bf16.msra.mxu0 %v1710_v8  ;;  %v1805_v7 = vld [vmem:[#allocation5 + $0x384] ss:$8 sps:$4 sm:$0xff]   ;;  %v1800_v8 = vld [vmem:[#allocation5 + $0x280] ss:$8 sps:$4 sm:$0xff]  }
  0x78   :  { %1020 = vmatpush1.bf16.msra.mxu1 %v1713_v9  ;;  %980 = vmatprep.subr.bf16.mxu0 %v1718_v10  ;;  %v1803_v9 = vld [vmem:[#allocation5 + $0x380] ss:$8 sps:$4 sm:$0xff]   ;;  %v1389_v10 = vcombine.low %v2033_v34, %v2033_v34 }
  0x79   :  { %1021 = vmatprep.subr.bf16.mxu1 %v1721_v11  ;;  %1010 = vmatprep.mubr.bf16.mxu0 %v1390_v38  ;;  %v1391_v11 = vcombine.low %v2035_v35, %v2035_v35 }
  0x7a   :  { %1051 = vmatprep.mubr.bf16.mxu1 %v1392_v39 }
  0x7b   :  { %981 = vmatpush1.bf16.msra.mxu0 %v1716_v12  ;;  %v1810_v12 = vld [vmem:[#allocation7 + $0x78] sm:$0xff]  }
  0x7c   :  { %1022 = vmatpush1.bf16.msra.mxu1 %v1719_v13  ;;  %982 = vmatprep.subr.bf16.mxu0 %v1724_v14  ;;  %v1811_v13 = vld [vmem:[#allocation7 + $0x38] sm:$0xff]   ;;  %v1812_v14 = vld [vmem:[#allocation7 + $0x70] sm:$0xff]  }
  0x7d   :  { %1023 = vmatprep.subr.bf16.mxu1 %v1727_v15  ;;  %v1813_v15 = vld [vmem:[#allocation7 + $0x30] sm:$0xff]  }
  0x7f   :  { %983 = vmatpush1.bf16.msra.mxu0 %v1722_v16  ;;  %v1814_v16 = vld [vmem:[#allocation7 + $0x68] sm:$0xff]  }
  0x80   :  { %1024 = vmatpush1.bf16.msra.mxu1 %v1725_v17  ;;  %984 = vmatprep.subr.bf16.mxu0 %v1730_v18  ;;  %v1815_v17 = vld [vmem:[#allocation7 + $0x28] sm:$0xff]   ;;  %v1816_v18 = vld [vmem:[#allocation7 + $0x60] sm:$0xff]  }
  0x81   :  { %1025 = vmatprep.subr.bf16.mxu1 %v1733_v19  ;;  %v1817_v19 = vld [vmem:[#allocation7 + $0x20] sm:$0xff]  }
  0x83   :  { %985 = vmatpush1.bf16.msra.mxu0 %v1728_v20  ;;  %v1818_v20 = vld [vmem:[#allocation7 + $0x58] sm:$0xff]  }
  0x84   :  { %1026 = vmatpush1.bf16.msra.mxu1 %v1731_v21  ;;  %986 = vmatprep.subr.bf16.mxu0 %v1736_v22  ;;  %v1819_v21 = vld [vmem:[#allocation7 + $0x18] sm:$0xff]   ;;  %v1820_v22 = vld [vmem:[#allocation7 + $0x50] sm:$0xff]  }
  0x85   :  { %1027 = vmatprep.subr.bf16.mxu1 %v1739_v23  ;;  %v1821_v23 = vld [vmem:[#allocation7 + $0x10] sm:$0xff]  }
  0x87   :  { %987 = vmatpush1.bf16.msra.mxu0 %v1734_v24  ;;  %v1822_v24 = vld [vmem:[#allocation7 + $0x48] sm:$0xff]  }
  0x88   :  { %1028 = vmatpush1.bf16.msra.mxu1 %v1737_v25  ;;  %988 = vmatprep.subr.bf16.mxu0 %v1742_v26  ;;  %v1823_v25 = vld [vmem:[#allocation7 + $0x8] sm:$0xff]   ;;  %v1824_v26 = vld [vmem:[#allocation7 + $0x40] sm:$0xff]  }
  0x89   :  { %1029 = vmatprep.subr.bf16.mxu1 %v1745_v27  ;;  %v1825_v27 = vld [vmem:[#allocation7] sm:$0xff]  }
  0x8b   :  { %989 = vmatpush1.bf16.msra.mxu0 %v1740_v28  ;;  %v1826_v28 = vld [vmem:[#allocation8 + $0x38] sm:$0xff]  }
  0x8c   :  { %1030 = vmatpush1.bf16.msra.mxu1 %v1743_v29  ;;  %990 = vmatprep.subr.bf16.mxu0 %v1748_v30  ;;  %v1972_v29 = vmov 0.0   ;;  %v1827_v30 = vld [vmem:[#allocation8 + $0x30] sm:$0xff]  }
  0x8d   :  { %1031 = vmatprep.subr.bf16.mxu1 %v1751_v31  ;;  %v1828_v31 = vld [vmem:[#allocation8 + $0x28] sm:$0xff]  }
  0x8f   :  { %991 = vmatpush1.bf16.msra.mxu0 %v1746_v32  ;;  %v1829_v32 = vld [vmem:[#allocation8 + $0x20] sm:$0xff]  }
  0x90   :  { %1032 = vmatpush1.bf16.msra.mxu1 %v1749_v33  ;;  %992 = vmatprep.subr.bf16.mxu0 %v1754_v36  ;;  %v1830_v33 = vld [vmem:[#allocation8 + $0x18] sm:$0xff]  }
  0x91   :  { %1033 = vmatprep.subr.bf16.mxu1 %v1757_v37 }
  0x93   :  { %993 = vmatpush1.bf16.msra.mxu0 %v1752_v40 }
  0x94   :  { %1034 = vmatpush1.bf16.msra.mxu1 %v1755_v41  ;;  %994 = vmatprep.subr.bf16.mxu0 %v1760_v42  ;;  %v218_v42 = vlaneseq }
  0x95   :  { %1035 = vmatprep.subr.bf16.mxu1 %v1763_v43 }
  0x96   :  { %v219_v43 = vshrl.u32 %v218_v42, 7 }
  0x97   :  { %995 = vmatpush2.bf16.msra.mxu0 %v1758_v44 }
  0x98   :  { %1036 = vmatpush2.bf16.msra.mxu1 %v1761_v45  ;;  %996 = vmatprep.subr.bf16.mxu0 %v1766_v46  ;;  %v220_v44 = vsub.s32 0, %v219_v43  ;;  %v216_v45 = vld [vmem:[%s2062_s2] sm:$0x3]  ;;  %v224_v46 = vsub.s32 1, %v219_v43 }
  0x99   :  { %1037 = vmatprep.subr.bf16.mxu1 %v1769_v47 }
  0x9a   :  { %v221_v47 = vrot.slane %v216_v45, %v220_v44 }
  0x9b   :  { %997 = vmatpush2.bf16.msra.mxu0 %v1764_v48  ;;  %v225_v48 = vrot.slane %v216_v45, %v224_v46 }
  0x9c   :  { %1038 = vmatpush2.bf16.msra.mxu1 %v1767_v49  ;;  %998 = vmatprep.subr.bf16.mxu0 %v1772_v50 }
  0x9d   :  { %1039 = vmatprep.subr.bf16.mxu1 %v1775_v51 }
  0x9f   :  { %999 = vmatpush2.bf16.msra.mxu0 %v1770_v52 }
  0xa0   :  { %1040 = vmatpush2.bf16.msra.mxu1 %v1773_v53  ;;  %1000 = vmatprep.subr.bf16.mxu0 %v1778_v54 }
  0xa1   :  { %1041 = vmatprep.subr.bf16.mxu1 %v1781_v55 }
  0xa3   :  { %1001 = vmatpush2.bf16.msra.mxu0 %v1776_v56 }
  0xa4   :  { %1042 = vmatpush2.bf16.msra.mxu1 %v1779_v57  ;;  %1002 = vmatprep.subr.bf16.mxu0 %v1784_v58 }
  0xa5   :  { %1043 = vmatprep.subr.bf16.mxu1 %v1787_v59 }
  0xa7   :  { %1003 = vmatpush2.bf16.msra.mxu0 %v1782_v60 }
  0xa8   :  { %1044 = vmatpush2.bf16.msra.mxu1 %v1785_v61  ;;  %1004 = vmatprep.subr.bf16.mxu0 %v1790_v62 }
  0xa9   :  { %1045 = vmatprep.subr.bf16.mxu1 %v1793_v63 }
  0xab   :  { %1005 = vmatpush2.bf16.msra.mxu0 %v1788_v0 }
  0xac   :  { %1046 = vmatpush2.bf16.msra.mxu1 %v1791_v1  ;;  %1006 = vmatprep.subr.bf16.mxu0 %v1796_v2 }
  0xad   :  { %1047 = vmatprep.subr.bf16.mxu1 %v1799_v3 }
  0xaf   :  { %1007 = vmatpush2.bf16.msra.mxu0 %v1794_v4 }
  0xb0   :  { %1048 = vmatpush2.bf16.msra.mxu1 %v1797_v5  ;;  %1008 = vmatprep.subr.bf16.mxu0 %v1802_v6  ;;  %v1831_v5 = vld [vmem:[#allocation8 + $0x10] sm:$0xff]   ;;  %v1832_v6 = vld [vmem:[#allocation8 + $0x8] sm:$0xff]  }
  0xb1   :  { %1049 = vmatprep.subr.bf16.mxu1 %v1805_v7  ;;  %v1833_v7 = vld [vmem:[#allocation8] sm:$0xff]  }
  0xb3   :  { %1009 = vmatpush2.bf16.msra.mxu0 %v1800_v8 }
  0xb4   :  { %1050 = vmatpush2.bf16.msra.mxu1 %v1803_v9  ;;  %1547 = vmatprep.subr.bf16.mxu0 %v1810_v12  ;;  %v1521_v9 = vld [vmem:[%s2064_s4] ss:$0 sm:$0xff] }
  0xb5   :  { %1578 = vmatprep.subr.bf16.mxu1 %v1972_v29 }
  0xb6   :  { %1011 = vmatmul.mubr.bf16.vlgmr.msra.gmra.mxu0 %v1389_v10 }
  0xb7   :  { %1052 = vmatmul.mubr.bf16.vlgmr.msra.gmra.mxu1 %v1391_v11  ;;  %1548 = vmatpush3.bf16.msra.mxu0 %v1811_v13 }
  0xb8   :  { %1549 = vmatprep.subr.bf16.mxu0 %v1812_v14  ;;  %1579 = vmatpush3.bf16.msra.mxu1 %v1826_v28 }
  0xb9   :  { %1580 = vmatprep.subr.bf16.mxu1 %v1972_v29  ;;  %1594 = vmatprep.mubr.msk.bf16.mxu1 %vm1973_vm0, %v1972_v29 }
  0xbb   :  { %1550 = vmatpush3.bf16.msra.mxu0 %v1813_v15 }
  0xbc   :  { %1551 = vmatprep.subr.bf16.mxu0 %v1814_v16  ;;  %1581 = vmatpush3.bf16.msra.mxu1 %v1827_v30 }
  0xbd   :  { %1582 = vmatprep.subr.bf16.mxu1 %v1972_v29 }
  0xbf   :  { %1552 = vmatpush3.bf16.msra.mxu0 %v1815_v17 }
  0xc0   :  { %1553 = vmatprep.subr.bf16.mxu0 %v1816_v18  ;;  %1583 = vmatpush3.bf16.msra.mxu1 %v1828_v31 }
  0xc1   :  { %1584 = vmatprep.subr.bf16.mxu1 %v1972_v29 }
  0xc3   :  { %1554 = vmatpush3.bf16.msra.mxu0 %v1817_v19 }
  0xc4   :  { %1555 = vmatprep.subr.bf16.mxu0 %v1818_v20  ;;  %1585 = vmatpush3.bf16.msra.mxu1 %v1829_v32 }
  0xc5   :  { %1586 = vmatprep.subr.bf16.mxu1 %v1972_v29 }
  0xc7   :  { %1556 = vmatpush3.bf16.msra.mxu0 %v1819_v21 }
  0xc8   :  { %1557 = vmatprep.subr.bf16.mxu0 %v1820_v22  ;;  %1587 = vmatpush3.bf16.msra.mxu1 %v1830_v33 }
  0xc9   :  { %1588 = vmatprep.subr.bf16.mxu1 %v1972_v29 }
  0xcb   :  { %1558 = vmatpush3.bf16.msra.mxu0 %v1821_v23 }
  0xcc   :  { %1559 = vmatprep.subr.bf16.mxu0 %v1822_v24  ;;  %1589 = vmatpush3.bf16.msra.mxu1 %v1831_v5 }
  0xcd   :  { %1590 = vmatprep.subr.bf16.mxu1 %v1972_v29 }
  0xcf   :  { %1560 = vmatpush3.bf16.msra.mxu0 %v1823_v25 }
  0xd0   :  { %1561 = vmatprep.subr.bf16.mxu0 %v1824_v26  ;;  %1591 = vmatpush3.bf16.msra.mxu1 %v1832_v6 }
  0xd1   :  { %1592 = vmatprep.subr.bf16.mxu1 %v1972_v29 }
  0xd3   :  { %1562 = vmatpush3.bf16.msra.mxu0 %v1825_v27 }
  0xd4   :  { %1593 = vmatpush3.bf16.msra.mxu1 %v1833_v7 }
 0x136   :  { %v930_v34 = vpop.f32.mrf.mxu0 }
 0x137   :  { %v971_v35 = vpop.f32.mrf.mxu1  ;;  %v931_v49 = vadd.f32 %v930_v34, %v221_v47 }
 0x138   :  { %v932_v36 = vpop.f32.mrf.mxu0 }
 0x139   :  { %v973_v37 = vpop.f32.mrf.mxu1  ;;  %v933_v50 = vadd.f32 %v932_v36, %v225_v48  ;;  %v972_v51 = vadd.f32 %v971_v35, %v931_v49 }
 0x13a   :  { %v934_v38 = vpop.f32.mrf.mxu0 }
 0x13b   :  { %v975_v39 = vpop.f32.mrf.mxu1  ;;  %v974_v54 = vadd.f32 %v973_v37, %v933_v50 }
 0x13c   :  { %v935_v40 = vpop.f32.mrf.mxu0 }
 0x13d   :  { %v976_v41 = vpop.f32.mrf.mxu1 }
 0x176   :  { %v1012_v52 = vpop.f32.mrf.mxu0 }
 0x177   :  { %v1053_v53 = vpop.f32.mrf.mxu1  ;;  %v1013_v55 = vadd.f32 %v1012_v52, %v972_v51 }
 0x178   :  { %v1014_v56 = vpop.f32.mrf.mxu0 }
 0x179   :  { %v1055_v57 = vpop.f32.mrf.mxu1  ;;  %v1054_v58 = vadd.f32 %v1053_v53, %v1013_v55  ;;  %v1015_v59 = vadd.f32 %v1014_v56, %v974_v54 }
 0x17a   :  { %v1016_v60 = vpop.f32.mrf.mxu0 }
 0x17b   :  { %v1057_v61 = vpop.f32.mrf.mxu1  ;;  %v1056_v62 = vadd.f32 %v1055_v57, %v1015_v59  ;;  %v1060_v63 = vmax.f32 %v1054_v58, 0.0 }
 0x17c   :  { %v1017_v0 = vpop.f32.mrf.mxu0 }
 0x17d   :  { %v1058_v1 = vpop.f32.mrf.mxu1  ;;  %v1061_v2 = vmax.f32 %v1056_v62, 0.0  ;;  %v1062_v4 = vpack.c.bf16 %v1060_v63, %v1060_v63 }
 0x17f   :  { %v1063_v3 = vpack.c.bf16 %v1061_v2, %v1061_v2 }
 0x181   :  { %1231 = vmatprep.mubr.bf16.mxu0 %v1063_v3 }
 0x182   :  { %1232 = vmatmul.mubr.bf16.vlgmr.msra.gmra.mxu0 %v1062_v4 }
 0x242   :  { %v1563_v8 = vpop.f32.mrf.mxu0 }
 0x244   :  { %v1564_v10 = vpop.f32.mrf.mxu0 }
 0x245   :  { %v1565_v11 = vadd.f32 %v1564_v10, %v1563_v8 }
 0x246   :  { %v1566_v12 = vpop.f32.mrf.mxu0 }
 0x247   :  { %v1234_v13 = vadd.f32 %v1565_v11, %v1521_v9 }
 0x248   :  { %v1567_v14 = vpop.f32.mrf.mxu0 }
 0x249   :  { %v1239_v15 = vmax.f32 %v1234_v13, 0.0 }
 0x24b   :  { %v1240_v16 = vpack.c.bf16 %v1239_v15, %v1239_v15  ;;  %1353 = vst [vmem:[#allocation11] sm:$0xff] %v1239_v15 }
 0x24d   :  { %1595 = vmatmul.mubr.bf16.vlgmr.msra.gmra.mxu1 %v1240_v16 }
 0x24e   :  { %1925 = shalt.err (!%p1922_p10)
}
 0x24f   :  { %1373 = dma.vmem_to_hbm [thread:$0]  %s1371_s29, 128, %s2068_s8, [#allocation12]   ;;  %v1538_v17 = vld [vmem:[%s2066_s6] ss:$0 sm:$0xff] }
 0x250   :  { %s1975_s12 = smov [#allocation10]  }
 0x251   :  { %s1360_s13 = sshll.u32 %s1975_s12, 4  ;;  %s1361_s13 = int_to_ptr.vmem [resolvable:$true] %s1360_s13 }
 0x252   :  { %s1934_s14 = scalar_lea.vmem %s1361_s13, 128  ;;  %p1939_p12 = scmp.lt.s32.totalorder %s1361_s13, %s1361_s13 }
 0x253   :  { %p1935_p11 = scmp.ne.s32.totalorder %s1361_s13, %s1934_s14  ;;  %p1940_p13 = scmp.lt.s32.totalorder %s1934_s14, %s1934_s14 }
 0x255   :  { %p1941_p0 = por %p1940_p13, %p1939_p12 }
 0x257   :  { %p1942_p1 = pnand %p1941_p0, %p1935_p11 }
 0x30d   :  { %v1346_v18 = vpop.f32.mrf.mxu1 }
 0x30e   :  { %v1347_v19 = vadd.f32 %v1538_v17, %v1346_v18 }
 0x30f   :  { %v1596_v20 = vpop.f32.mrf.mxu1 }
 0x310   :  { %1352 = vst [vmem:[#allocation10] sm:$0xff] %v1347_v19 }
 0x311   :  { %v1349_v21 = vpop.f32.mrf.mxu1 }
 0x312   :  { %1945 = shalt.err (!%p1942_p1)
}
 0x313   :  { %1363 = dma.vmem_to_hbm [thread:$0]  %s1361_s13, 128, %s2067_s7, [#allocation4]   ;;  %v1597_v22 = vpop.f32.mrf.mxu1 }
 0x314   :  { %1960 = dma.done.wait [#allocation4], 128  }
 0x315   :  { %1961 = vsyncadd [#allocation4], 4294967168 }
 0x316   :  { %1962 = dma.done.wait [#allocation12], 128  }
 0x317   :  { %1963 = vsyncadd [#allocation12], 4294967168 }
 0x318   :  { %1380 = vsyncpa [#allocation3], 1 }
 0x319   :  { %1381 = vsyncpa [#allocation6], 1 }
 0x31a   :  { %1382 = vsyncpa [#allocation9], 1 }
 0x31b   :  { %1383 = vsyncpa [#allocation4], 1 }
 0x31c   :  { %1384 = vsyncpa [#allocation12], 1 }

</bundles_post_ra>
